<compile_context>
chip_gen: v7x
topology: tpu7x:2x2x1
jax: 0.10.0
libtpu: 0.0.40
codegen_flags: <defaults>
</compile_context>

<pallas_src>
import functools

import jax
import jax.numpy as jnp
import numpy as np
from jax.experimental import pallas as pl
from jax.experimental.pallas import tpu as pltpu


# ----------------------------------------------------------------------------
# Fused kernel: non-local attention + depthwise 3x3 conv (rolled taps) +
# BN (batch stats) + residual add, for one block of `cb` channels.
# Everything is f32 internally, spatial dims flattened onto the lane axis.
# ----------------------------------------------------------------------------
def _nonlocal_fused_kernel(lth_ref, lph_ref, g_ref, lres_ref, w_ref,
                           gamma_ref, beta_ref, mask_ref, out_ref,
                           *, Cc, W, eps):
    N, cb, HW = out_ref.shape

    # ---- load + in-kernel channel slicing (no wrapper-side theta/phi copies) --
    theta = lth_ref[...].astype(jnp.float32)[:, :Cc, :]      # (N, Cc, HW)
    phi = lph_ref[...].astype(jnp.float32)[:, :Cc, :]        # (N, Cc, R)
    g = g_ref[...].astype(jnp.float32)                       # (N, cb, R)

    # ---- non-local attention ('nij' ordering) on the VPU, full f32 ----------
    # f[n, j, p] = sum_i ( sum_r phi[n,i,r] * g[n,j,r] ) * theta[n,i,p]
    # (contraction is far below MXU granularity -> broadcast-FMA + lane reduce)
    f = jnp.zeros((N, cb, HW), jnp.float32)
    for i in range(Cc):                        # Cc is small & static -> unrolled
        f1_i = jnp.sum(phi[:, i:i + 1, :] * g, axis=-1, keepdims=True)  # (N,cb,1)
        f = f + f1_i * theta[:, i:i + 1, :]                             # (N,cb,HW)
    # (the `f / H * W` scale is folded into the depthwise weights in the wrapper)

    # ---- depthwise 3x3 conv: register-resident taps via XLU rolls ------------
    # tap (dh,dw) at flat position p reads f[p + dh*W + dw]; pltpu.roll gives the
    # circular shift and the (9, HW) 0/1 mask zeroes out-of-image positions.
    w_all = w_ref[...].astype(jnp.float32)     # (cb, 9), pre-scaled by W/H
    mask = mask_ref[...]                       # (9, HW) border masks
    y = jnp.zeros((N, cb, HW), jnp.float32)
    k = 0
    for dh in (-1, 0, 1):
        for dw in (-1, 0, 1):
            off = dh * W + dw
            wk = w_all[:, k:k + 1]             # (cb, 1)
            if off == 0:
                y = y + wk * f                 # center tap: mask is all-ones
            else:
                tap = pltpu.roll(f, shift=(-off) % HW, axis=2)
                y = y + (wk * mask[k:k + 1, :]) * tap
            k += 1

    # ---- BatchNorm (training mode: biased batch stats per channel) ----------
    inv_cnt = 1.0 / float(N * HW)
    mean = jnp.sum(y, axis=(0, 2), keepdims=True) * inv_cnt   # (1, cb, 1)
    d = y - mean
    var = jnp.sum(d * d, axis=(0, 2), keepdims=True) * inv_cnt
    inv = jax.lax.rsqrt(var + eps)

    gamma = gamma_ref[...].astype(jnp.float32)[None, :, :]    # (1, cb, 1)
    beta = beta_ref[...].astype(jnp.float32)[None, :, :]      # (1, cb, 1)
    res = lres_ref[...].astype(jnp.float32)                   # (N, cb, HW)
    out_ref[...] = (gamma * (d * inv) + beta + res).astype(out_ref.dtype)


def _num_tensorcores():
    """Best-effort TensorCore count per chip: 2 on v7x, 1 on v5e/v6e."""
    try:
        kind = jax.devices()[0].device_kind.lower()
    except Exception:
        return 1
    return 2 if "v7" in kind else 1


# ----------------------------------------------------------------------------
# Wrapper
# ----------------------------------------------------------------------------
@functools.partial(jax.jit, static_argnames=("nl_c", "nl_s", "eps"))
def nonlocal_forward(l, w_dw, gamma, beta, *, nl_c, nl_s, eps=1e-5):
    N, C, H, W = l.shape
    Cc = int(nl_c * C)
    HW = H * W

    # Strided spatial subsample left to XLA (see TODO).  Original dtype kept.
    lr = l[:, :, ::nl_s, ::nl_s]
    R = lr.shape[2] * lr.shape[3]

    l_flat = l.reshape(N, C, HW)               # no f32 upcast here (done in-kernel)
    lr_flat = lr.reshape(N, C, R)

    # theta/phi are NOT materialised: the kernel reads the first Cc channels of
    # an 8-channel-aligned constant block of l_flat / lr_flat directly.
    Cc_pad = min(C, -(-Cc // 8) * 8)

    # Fold the `f / H * W` scale into the (linear) depthwise conv weights.
    w_flat = w_dw.reshape(C, 9).astype(jnp.float32) * (float(W) / float(H))
    gamma2 = gamma.reshape(C, 1).astype(jnp.float32)
    beta2 = beta.reshape(C, 1).astype(jnp.float32)

    # (9, HW) 0/1 validity masks for the rolled conv taps (static constants).
    rows = np.arange(HW, dtype=np.int64) // W
    cols = np.arange(HW, dtype=np.int64) % W
    masks = []
    for dh in (-1, 0, 1):
        for dw in (-1, 0, 1):
            rv = (rows + dh >= 0) & (rows + dh <= H - 1)
            cv = (cols + dw >= 0) & (cols + dw <= W - 1)
            masks.append((rv & cv).astype(np.float32))
    mask9 = jnp.asarray(np.stack(masks, axis=0))               # (9, HW)

    # Channel blocking: one block per TensorCore.  v5e/v6e (1 TC): single grid
    # step (no wasted sequential iteration); v7x (2 TCs): 2-way "parallel" split.
    ntc = _num_tensorcores()
    nblk = ntc if (ntc > 1 and C % (8 * ntc) == 0) else 1
    cb = C // nblk

    def _bcast_spec(shape):
        idx = lambda c: (0,) * len(shape)
        if nblk > 1:
            # Constant-index broadcast inputs: no need to double-buffer them
            # (halves their resident VMEM footprint on v7x's 64 MiB VMEM).
            return pl.BlockSpec(shape, idx, pipeline_mode=pl.Buffered(1))
        return pl.BlockSpec(shape, idx)

    kern = functools.partial(_nonlocal_fused_kernel, Cc=Cc, W=W, eps=eps)
    out_flat = pl.pallas_call(
        kern,
        out_shape=jax.ShapeDtypeStruct((N, C, HW), l.dtype),
        grid_spec=pltpu.PrefetchScalarGridSpec(
            num_scalar_prefetch=0,
            grid=(nblk,),
            in_specs=[
                _bcast_spec((N, Cc_pad, HW)),                     # l_flat  -> theta
                _bcast_spec((N, Cc_pad, R)),                      # lr_flat -> phi
                pl.BlockSpec((N, cb, R), lambda c: (0, c, 0)),    # lr_flat -> g
                pl.BlockSpec((N, cb, HW), lambda c: (0, c, 0)),   # l_flat  -> residual
                pl.BlockSpec((cb, 9), lambda c: (c, 0)),          # dw conv weights
                pl.BlockSpec((cb, 1), lambda c: (c, 0)),          # BN gamma
                pl.BlockSpec((cb, 1), lambda c: (c, 0)),          # BN beta
                _bcast_spec((9, HW)),                             # border masks
            ],
            out_specs=pl.BlockSpec((N, cb, HW), lambda c: (0, c, 0)),
        ),
        compiler_params=pltpu.CompilerParams(
            dimension_semantics=("parallel",)),
    )(l_flat, lr_flat, lr_flat, l_flat, w_flat, gamma2, beta2, mask9)

    return out_flat.reshape(N, C, H, W)


# ----------------------------------------------------------------------------
# Pure-JAX reference (mirrors the PyTorch forward, BN in training mode)
# ----------------------------------------------------------------------------
def nonlocal_reference(l, w_dw, gamma, beta, *, nl_c, nl_s, eps=1e-5):
    N, C, H, W = l.shape
    Cc = int(nl_c * C)
    reduced_HW = (H // nl_s) * (W // nl_s)
    lr = l[:, :, ::nl_s, ::nl_s]
    theta, phi, g = l[:, :Cc], lr[:, :Cc], lr
    if H * W * reduced_HW * C * (1 + nl_c) < H * W * C ** 2 * nl_c + reduced_HW * C ** 2 * nl_c:
        f = jnp.einsum('niab,nicd->nabcd', theta, phi, precision='highest')
        f = jnp.einsum('nabcd,nicd->niab', f, g, precision='highest')
    else:
        f = jnp.einsum('nihw,njhw->nij', phi, g, precision='highest')
        f = jnp.einsum('nij,nihw->njhw', f, theta, precision='highest')
    f = f / H * W
    y = jax.lax.conv_general_dilated(
        f, w_dw.reshape(C, 1, 3, 3), (1, 1), ((1, 1), (1, 1)),
        dimension_numbers=('NCHW', 'OIHW', 'NCHW'), feature_group_count=C)
    mean = y.mean(axis=(0, 2, 3), keepdims=True)
    var = ((y - mean) ** 2).mean(axis=(0, 2, 3), keepdims=True)
    yn = (y - mean) / jnp.sqrt(var + eps)
    yn = yn * gamma[None, :, None, None] + beta[None, :, None, None]
    return yn + l


if __name__ == "__main__":
    # Module config: n_feature=16, nl_c=0.25, nl_s=2 (typical lightweight setting).
    N, C, H, W = 2, 16, 16, 16
    nl_c, nl_s = 0.25, 2

    key = jax.random.PRNGKey(0)
    k_l, k_w, k_g, k_b = jax.random.split(key, 4)
    l = jax.random.normal(k_l, (N, C, H, W), jnp.float32)
    w_dw = jax.random.normal(k_w, (C, 3, 3), jnp.float32) * 0.1    # depthwise weight
    gamma = 1.0 + 0.1 * jax.random.normal(k_g, (C,), jnp.float32)  # BN weight (non-zero)
    beta = 0.1 * jax.random.normal(k_b, (C,), jnp.float32)         # BN bias

    out = nonlocal_forward(l, w_dw, gamma, beta, nl_c=nl_c, nl_s=nl_s)
    out = jax.block_until_ready(out)

    ref = jax.block_until_ready(
        nonlocal_reference(l, w_dw, gamma, beta, nl_c=nl_c, nl_s=nl_s))

    np.testing.assert_allclose(np.asarray(out), np.asarray(ref), rtol=2e-3, atol=2e-3)
    print("KERNEL_OK")
</pallas_src>

<mosaic_0001>
module attributes {stable_mosaic.version = 11 : i64} {
  func.func @_nonlocal_fused_kernel(%arg0: i32, %arg1: memref<2x8x256xf32, #tpu.memory_space<vmem>>, %arg2: memref<2x8x64xf32, #tpu.memory_space<vmem>>, %arg3: memref<2x16x64xf32, #tpu.memory_space<vmem>>, %arg4: memref<2x16x256xf32, #tpu.memory_space<vmem>>, %arg5: memref<16x9xf32, #tpu.memory_space<vmem>>, %arg6: memref<16x1xf32, #tpu.memory_space<vmem>>, %arg7: memref<16x1xf32, #tpu.memory_space<vmem>>, %arg8: memref<9x256xf32, #tpu.memory_space<vmem>>, %arg9: memref<2x16x256xf32, #tpu.memory_space<vmem>>) attributes {dimension_semantics = [#tpu.dimension_semantics<parallel>], iteration_bounds = array<i64: 1>, scalar_prefetch = 0 : i64, scratch_operands = 0 : i64, tpu.core_type = #tpu.core_type<tc>, window_params = [{transform_indices = @transform_0, window_bounds = array<i64: 2, 8, 256>}, {transform_indices = @transform_1, window_bounds = array<i64: 2, 8, 64>}, {transform_indices = @transform_2, window_bounds = array<i64: 2, 16, 64>}, {transform_indices = @transform_3, window_bounds = array<i64: 2, 16, 256>}, {transform_indices = @transform_4, window_bounds = array<i64: 16, 9>}, {transform_indices = @transform_5, window_bounds = array<i64: 16, 1>}, {transform_indices = @transform_6, window_bounds = array<i64: 16, 1>}, {pipeline_mode = #tpu.pipeline_mode<synchronous>, transform_indices = @transform_7, window_bounds = array<i64: 9, 256>}, {transform_indices = @transform_8, window_bounds = array<i64: 2, 16, 256>}]} {
    %c0 = arith.constant 0 : index
    %c0_0 = arith.constant 0 : index
    %c0_1 = arith.constant 0 : index
    %0 = vector.load %arg1[%c0, %c0_0, %c0_1] : memref<2x8x256xf32, #tpu.memory_space<vmem>>, vector<2x8x256xf32>
    %1 = vector.extract_strided_slice %0 {offsets = [0, 0, 0], sizes = [2, 4, 256], strides = [1, 1, 1]} : vector<2x8x256xf32> to vector<2x4x256xf32>
    %c0_2 = arith.constant 0 : index
    %c0_3 = arith.constant 0 : index
    %c0_4 = arith.constant 0 : index
    %2 = vector.load %arg2[%c0_2, %c0_3, %c0_4] : memref<2x8x64xf32, #tpu.memory_space<vmem>>, vector<2x8x64xf32>
    %3 = vector.extract_strided_slice %2 {offsets = [0, 0, 0], sizes = [2, 4, 64], strides = [1, 1, 1]} : vector<2x8x64xf32> to vector<2x4x64xf32>
    %c0_5 = arith.constant 0 : index
    %c0_6 = arith.constant 0 : index
    %c0_7 = arith.constant 0 : index
    %4 = vector.load %arg3[%c0_5, %c0_6, %c0_7] : memref<2x16x64xf32, #tpu.memory_space<vmem>>, vector<2x16x64xf32>
    %cst = arith.constant 0.000000e+00 : f32
    %5 = vector.broadcast %cst : f32 to vector<2x16x256xf32>
    %6 = vector.extract_strided_slice %3 {offsets = [0, 0, 0], sizes = [2, 1, 64], strides = [1, 1, 1]} : vector<2x4x64xf32> to vector<2x1x64xf32>
    %7 = vector.broadcast %6 : vector<2x1x64xf32> to vector<2x16x64xf32>
    %8 = arith.mulf %7, %4 : vector<2x16x64xf32>
    %cst_8 = arith.constant dense<0.000000e+00> : vector<2x16xf32>
    %9 = vector.multi_reduction <add>, %8, %cst_8 [2] : vector<2x16x64xf32> to vector<2x16xf32>
    %10 = vector.shape_cast %9 : vector<2x16xf32> to vector<2x16x1xf32>
    %11 = vector.extract_strided_slice %1 {offsets = [0, 0, 0], sizes = [2, 1, 256], strides = [1, 1, 1]} : vector<2x4x256xf32> to vector<2x1x256xf32>
    %12 = vector.broadcast %10 : vector<2x16x1xf32> to vector<2x16x256xf32>
    %13 = vector.broadcast %11 : vector<2x1x256xf32> to vector<2x16x256xf32>
    %14 = arith.mulf %12, %13 : vector<2x16x256xf32>
    %15 = arith.addf %5, %14 : vector<2x16x256xf32>
    %16 = vector.extract_strided_slice %3 {offsets = [0, 1, 0], sizes = [2, 1, 64], strides = [1, 1, 1]} : vector<2x4x64xf32> to vector<2x1x64xf32>
    %17 = vector.broadcast %16 : vector<2x1x64xf32> to vector<2x16x64xf32>
    %18 = arith.mulf %17, %4 : vector<2x16x64xf32>
    %cst_9 = arith.constant dense<0.000000e+00> : vector<2x16xf32>
    %19 = vector.multi_reduction <add>, %18, %cst_9 [2] : vector<2x16x64xf32> to vector<2x16xf32>
    %20 = vector.shape_cast %19 : vector<2x16xf32> to vector<2x16x1xf32>
    %21 = vector.extract_strided_slice %1 {offsets = [0, 1, 0], sizes = [2, 1, 256], strides = [1, 1, 1]} : vector<2x4x256xf32> to vector<2x1x256xf32>
    %22 = vector.broadcast %20 : vector<2x16x1xf32> to vector<2x16x256xf32>
    %23 = vector.broadcast %21 : vector<2x1x256xf32> to vector<2x16x256xf32>
    %24 = arith.mulf %22, %23 : vector<2x16x256xf32>
    %25 = arith.addf %15, %24 : vector<2x16x256xf32>
    %26 = vector.extract_strided_slice %3 {offsets = [0, 2, 0], sizes = [2, 1, 64], strides = [1, 1, 1]} : vector<2x4x64xf32> to vector<2x1x64xf32>
    %27 = vector.broadcast %26 : vector<2x1x64xf32> to vector<2x16x64xf32>
    %28 = arith.mulf %27, %4 : vector<2x16x64xf32>
    %cst_10 = arith.constant dense<0.000000e+00> : vector<2x16xf32>
    %29 = vector.multi_reduction <add>, %28, %cst_10 [2] : vector<2x16x64xf32> to vector<2x16xf32>
    %30 = vector.shape_cast %29 : vector<2x16xf32> to vector<2x16x1xf32>
    %31 = vector.extract_strided_slice %1 {offsets = [0, 2, 0], sizes = [2, 1, 256], strides = [1, 1, 1]} : vector<2x4x256xf32> to vector<2x1x256xf32>
    %32 = vector.broadcast %30 : vector<2x16x1xf32> to vector<2x16x256xf32>
    %33 = vector.broadcast %31 : vector<2x1x256xf32> to vector<2x16x256xf32>
    %34 = arith.mulf %32, %33 : vector<2x16x256xf32>
    %35 = arith.addf %25, %34 : vector<2x16x256xf32>
    %36 = vector.extract_strided_slice %3 {offsets = [0, 3, 0], sizes = [2, 1, 64], strides = [1, 1, 1]} : vector<2x4x64xf32> to vector<2x1x64xf32>
    %37 = vector.broadcast %36 : vector<2x1x64xf32> to vector<2x16x64xf32>
    %38 = arith.mulf %37, %4 : vector<2x16x64xf32>
    %cst_11 = arith.constant dense<0.000000e+00> : vector<2x16xf32>
    %39 = vector.multi_reduction <add>, %38, %cst_11 [2] : vector<2x16x64xf32> to vector<2x16xf32>
    %40 = vector.shape_cast %39 : vector<2x16xf32> to vector<2x16x1xf32>
    %41 = vector.extract_strided_slice %1 {offsets = [0, 3, 0], sizes = [2, 1, 256], strides = [1, 1, 1]} : vector<2x4x256xf32> to vector<2x1x256xf32>
    %42 = vector.broadcast %40 : vector<2x16x1xf32> to vector<2x16x256xf32>
    %43 = vector.broadcast %41 : vector<2x1x256xf32> to vector<2x16x256xf32>
    %44 = arith.mulf %42, %43 : vector<2x16x256xf32>
    %45 = arith.addf %35, %44 : vector<2x16x256xf32>
    %c0_12 = arith.constant 0 : index
    %c0_13 = arith.constant 0 : index
    %46 = vector.load %arg5[%c0_12, %c0_13] : memref<16x9xf32, #tpu.memory_space<vmem>>, vector<16x9xf32>
    %c0_14 = arith.constant 0 : index
    %c0_15 = arith.constant 0 : index
    %47 = vector.load %arg8[%c0_14, %c0_15] : memref<9x256xf32, #tpu.memory_space<vmem>>, vector<9x256xf32>
    %cst_16 = arith.constant 0.000000e+00 : f32
    %48 = vector.broadcast %cst_16 : f32 to vector<2x16x256xf32>
    %49 = vector.extract_strided_slice %46 {offsets = [0, 0], sizes = [16, 1], strides = [1, 1]} : vector<16x9xf32> to vector<16x1xf32>
    %c17_i32 = arith.constant 17 : i32
    %50 = tpu.dynamic_rotate %45 by %c17_i32 dim 2 : vector<2x16x256xf32>, i32 -> vector<2x16x256xf32>
    %51 = vector.extract_strided_slice %47 {offsets = [0, 0], sizes = [1, 256], strides = [1, 1]} : vector<9x256xf32> to vector<1x256xf32>
    %52 = vector.broadcast %49 : vector<16x1xf32> to vector<16x256xf32>
    %53 = vector.broadcast %51 : vector<1x256xf32> to vector<16x256xf32>
    %54 = arith.mulf %52, %53 : vector<16x256xf32>
    %55 = vector.shape_cast %54 : vector<16x256xf32> to vector<1x16x256xf32>
    %56 = vector.broadcast %55 : vector<1x16x256xf32> to vector<2x16x256xf32>
    %57 = arith.mulf %56, %50 : vector<2x16x256xf32>
    %58 = arith.addf %48, %57 : vector<2x16x256xf32>
    %59 = vector.extract_strided_slice %46 {offsets = [0, 1], sizes = [16, 1], strides = [1, 1]} : vector<16x9xf32> to vector<16x1xf32>
    %c16_i32 = arith.constant 16 : i32
    %60 = tpu.dynamic_rotate %45 by %c16_i32 dim 2 : vector<2x16x256xf32>, i32 -> vector<2x16x256xf32>
    %61 = vector.extract_strided_slice %47 {offsets = [1, 0], sizes = [1, 256], strides = [1, 1]} : vector<9x256xf32> to vector<1x256xf32>
    %62 = vector.broadcast %59 : vector<16x1xf32> to vector<16x256xf32>
    %63 = vector.broadcast %61 : vector<1x256xf32> to vector<16x256xf32>
    %64 = arith.mulf %62, %63 : vector<16x256xf32>
    %65 = vector.shape_cast %64 : vector<16x256xf32> to vector<1x16x256xf32>
    %66 = vector.broadcast %65 : vector<1x16x256xf32> to vector<2x16x256xf32>
    %67 = arith.mulf %66, %60 : vector<2x16x256xf32>
    %68 = arith.addf %58, %67 : vector<2x16x256xf32>
    %69 = vector.extract_strided_slice %46 {offsets = [0, 2], sizes = [16, 1], strides = [1, 1]} : vector<16x9xf32> to vector<16x1xf32>
    %c15_i32 = arith.constant 15 : i32
    %70 = tpu.dynamic_rotate %45 by %c15_i32 dim 2 : vector<2x16x256xf32>, i32 -> vector<2x16x256xf32>
    %71 = vector.extract_strided_slice %47 {offsets = [2, 0], sizes = [1, 256], strides = [1, 1]} : vector<9x256xf32> to vector<1x256xf32>
    %72 = vector.broadcast %69 : vector<16x1xf32> to vector<16x256xf32>
    %73 = vector.broadcast %71 : vector<1x256xf32> to vector<16x256xf32>
    %74 = arith.mulf %72, %73 : vector<16x256xf32>
    %75 = vector.shape_cast %74 : vector<16x256xf32> to vector<1x16x256xf32>
    %76 = vector.broadcast %75 : vector<1x16x256xf32> to vector<2x16x256xf32>
    %77 = arith.mulf %76, %70 : vector<2x16x256xf32>
    %78 = arith.addf %68, %77 : vector<2x16x256xf32>
    %79 = vector.extract_strided_slice %46 {offsets = [0, 3], sizes = [16, 1], strides = [1, 1]} : vector<16x9xf32> to vector<16x1xf32>
    %c1_i32 = arith.constant 1 : i32
    %80 = tpu.dynamic_rotate %45 by %c1_i32 dim 2 : vector<2x16x256xf32>, i32 -> vector<2x16x256xf32>
    %81 = vector.extract_strided_slice %47 {offsets = [3, 0], sizes = [1, 256], strides = [1, 1]} : vector<9x256xf32> to vector<1x256xf32>
    %82 = vector.broadcast %79 : vector<16x1xf32> to vector<16x256xf32>
    %83 = vector.broadcast %81 : vector<1x256xf32> to vector<16x256xf32>
    %84 = arith.mulf %82, %83 : vector<16x256xf32>
    %85 = vector.shape_cast %84 : vector<16x256xf32> to vector<1x16x256xf32>
    %86 = vector.broadcast %85 : vector<1x16x256xf32> to vector<2x16x256xf32>
    %87 = arith.mulf %86, %80 : vector<2x16x256xf32>
    %88 = arith.addf %78, %87 : vector<2x16x256xf32>
    %89 = vector.extract_strided_slice %46 {offsets = [0, 4], sizes = [16, 1], strides = [1, 1]} : vector<16x9xf32> to vector<16x1xf32>
    %90 = vector.shape_cast %89 : vector<16x1xf32> to vector<1x16x1xf32>
    %91 = vector.broadcast %90 : vector<1x16x1xf32> to vector<2x16x256xf32>
    %92 = arith.mulf %91, %45 : vector<2x16x256xf32>
    %93 = arith.addf %88, %92 : vector<2x16x256xf32>
    %94 = vector.extract_strided_slice %46 {offsets = [0, 5], sizes = [16, 1], strides = [1, 1]} : vector<16x9xf32> to vector<16x1xf32>
    %c255_i32 = arith.constant 255 : i32
    %95 = tpu.dynamic_rotate %45 by %c255_i32 dim 2 : vector<2x16x256xf32>, i32 -> vector<2x16x256xf32>
    %96 = vector.extract_strided_slice %47 {offsets = [5, 0], sizes = [1, 256], strides = [1, 1]} : vector<9x256xf32> to vector<1x256xf32>
    %97 = vector.broadcast %94 : vector<16x1xf32> to vector<16x256xf32>
    %98 = vector.broadcast %96 : vector<1x256xf32> to vector<16x256xf32>
    %99 = arith.mulf %97, %98 : vector<16x256xf32>
    %100 = vector.shape_cast %99 : vector<16x256xf32> to vector<1x16x256xf32>
    %101 = vector.broadcast %100 : vector<1x16x256xf32> to vector<2x16x256xf32>
    %102 = arith.mulf %101, %95 : vector<2x16x256xf32>
    %103 = arith.addf %93, %102 : vector<2x16x256xf32>
    %104 = vector.extract_strided_slice %46 {offsets = [0, 6], sizes = [16, 1], strides = [1, 1]} : vector<16x9xf32> to vector<16x1xf32>
    %c241_i32 = arith.constant 241 : i32
    %105 = tpu.dynamic_rotate %45 by %c241_i32 dim 2 : vector<2x16x256xf32>, i32 -> vector<2x16x256xf32>
    %106 = vector.extract_strided_slice %47 {offsets = [6, 0], sizes = [1, 256], strides = [1, 1]} : vector<9x256xf32> to vector<1x256xf32>
    %107 = vector.broadcast %104 : vector<16x1xf32> to vector<16x256xf32>
    %108 = vector.broadcast %106 : vector<1x256xf32> to vector<16x256xf32>
    %109 = arith.mulf %107, %108 : vector<16x256xf32>
    %110 = vector.shape_cast %109 : vector<16x256xf32> to vector<1x16x256xf32>
    %111 = vector.broadcast %110 : vector<1x16x256xf32> to vector<2x16x256xf32>
    %112 = arith.mulf %111, %105 : vector<2x16x256xf32>
    %113 = arith.addf %103, %112 : vector<2x16x256xf32>
    %114 = vector.extract_strided_slice %46 {offsets = [0, 7], sizes = [16, 1], strides = [1, 1]} : vector<16x9xf32> to vector<16x1xf32>
    %c240_i32 = arith.constant 240 : i32
    %115 = tpu.dynamic_rotate %45 by %c240_i32 dim 2 : vector<2x16x256xf32>, i32 -> vector<2x16x256xf32>
    %116 = vector.extract_strided_slice %47 {offsets = [7, 0], sizes = [1, 256], strides = [1, 1]} : vector<9x256xf32> to vector<1x256xf32>
    %117 = vector.broadcast %114 : vector<16x1xf32> to vector<16x256xf32>
    %118 = vector.broadcast %116 : vector<1x256xf32> to vector<16x256xf32>
    %119 = arith.mulf %117, %118 : vector<16x256xf32>
    %120 = vector.shape_cast %119 : vector<16x256xf32> to vector<1x16x256xf32>
    %121 = vector.broadcast %120 : vector<1x16x256xf32> to vector<2x16x256xf32>
    %122 = arith.mulf %121, %115 : vector<2x16x256xf32>
    %123 = arith.addf %113, %122 : vector<2x16x256xf32>
    %124 = vector.extract_strided_slice %46 {offsets = [0, 8], sizes = [16, 1], strides = [1, 1]} : vector<16x9xf32> to vector<16x1xf32>
    %c239_i32 = arith.constant 239 : i32
    %125 = tpu.dynamic_rotate %45 by %c239_i32 dim 2 : vector<2x16x256xf32>, i32 -> vector<2x16x256xf32>
    %126 = vector.extract_strided_slice %47 {offsets = [8, 0], sizes = [1, 256], strides = [1, 1]} : vector<9x256xf32> to vector<1x256xf32>
    %127 = vector.broadcast %124 : vector<16x1xf32> to vector<16x256xf32>
    %128 = vector.broadcast %126 : vector<1x256xf32> to vector<16x256xf32>
    %129 = arith.mulf %127, %128 : vector<16x256xf32>
    %130 = vector.shape_cast %129 : vector<16x256xf32> to vector<1x16x256xf32>
    %131 = vector.broadcast %130 : vector<1x16x256xf32> to vector<2x16x256xf32>
    %132 = arith.mulf %131, %125 : vector<2x16x256xf32>
    %133 = arith.addf %123, %132 : vector<2x16x256xf32>
    %cst_17 = arith.constant dense<0.000000e+00> : vector<16xf32>
    %134 = vector.multi_reduction <add>, %133, %cst_17 [0, 2] : vector<2x16x256xf32> to vector<16xf32>
    %135 = vector.shape_cast %134 : vector<16xf32> to vector<1x16x1xf32>
    %cst_18 = arith.constant 0.001953125 : f32
    %136 = vector.broadcast %cst_18 : f32 to vector<1x16x1xf32>
    %137 = arith.mulf %135, %136 : vector<1x16x1xf32>
    %138 = vector.broadcast %137 : vector<1x16x1xf32> to vector<2x16x256xf32>
    %139 = arith.subf %133, %138 : vector<2x16x256xf32>
    %140 = arith.mulf %139, %139 : vector<2x16x256xf32>
    %cst_19 = arith.constant dense<0.000000e+00> : vector<16xf32>
    %141 = vector.multi_reduction <add>, %140, %cst_19 [0, 2] : vector<2x16x256xf32> to vector<16xf32>
    %142 = vector.shape_cast %141 : vector<16xf32> to vector<1x16x1xf32>
    %cst_20 = arith.constant 0.001953125 : f32
    %143 = vector.broadcast %cst_20 : f32 to vector<1x16x1xf32>
    %144 = arith.mulf %142, %143 : vector<1x16x1xf32>
    %cst_21 = arith.constant 9.99999974E-6 : f32
    %145 = vector.broadcast %cst_21 : f32 to vector<1x16x1xf32>
    %146 = arith.addf %144, %145 : vector<1x16x1xf32>
    %147 = math.rsqrt %146 : vector<1x16x1xf32>
    %c0_22 = arith.constant 0 : index
    %c0_23 = arith.constant 0 : index
    %148 = vector.load %arg6[%c0_22, %c0_23] : memref<16x1xf32, #tpu.memory_space<vmem>>, vector<16x1xf32>
    %149 = vector.shape_cast %148 : vector<16x1xf32> to vector<1x16x1xf32>
    %c0_24 = arith.constant 0 : index
    %c0_25 = arith.constant 0 : index
    %150 = vector.load %arg7[%c0_24, %c0_25] : memref<16x1xf32, #tpu.memory_space<vmem>>, vector<16x1xf32>
    %151 = vector.shape_cast %150 : vector<16x1xf32> to vector<1x16x1xf32>
    %c0_26 = arith.constant 0 : index
    %c0_27 = arith.constant 0 : index
    %c0_28 = arith.constant 0 : index
    %152 = vector.load %arg4[%c0_26, %c0_27, %c0_28] : memref<2x16x256xf32, #tpu.memory_space<vmem>>, vector<2x16x256xf32>
    %153 = vector.broadcast %147 : vector<1x16x1xf32> to vector<2x16x256xf32>
    %154 = arith.mulf %139, %153 : vector<2x16x256xf32>
    %155 = vector.broadcast %149 : vector<1x16x1xf32> to vector<2x16x256xf32>
    %156 = arith.mulf %155, %154 : vector<2x16x256xf32>
    %157 = vector.broadcast %151 : vector<1x16x1xf32> to vector<2x16x256xf32>
    %158 = arith.addf %156, %157 : vector<2x16x256xf32>
    %159 = arith.addf %158, %152 : vector<2x16x256xf32>
    %c0_29 = arith.constant 0 : index
    %c0_30 = arith.constant 0 : index
    %c0_31 = arith.constant 0 : index
    %160 = vector.load %arg9[%c0_29, %c0_30, %c0_31] : memref<2x16x256xf32, #tpu.memory_space<vmem>>, vector<2x16x256xf32>
    tpu.vector_store %arg9[%c0_29, %c0_30, %c0_31], %159 {strides = array<i32>} : memref<2x16x256xf32, #tpu.memory_space<vmem>>, vector<2x16x256xf32>,
    return
  }
  func.func @transform_0(%arg0: i32) -> (i32, i32, i32) {
    %c0_i32 = arith.constant 0 : i32
    %c0_i32_0 = arith.constant 0 : i32
    %c0_i32_1 = arith.constant 0 : i32
    %c0_i32_2 = arith.constant 0 : i32
    return %c0_i32, %c0_i32_0, %c0_i32_1 : i32, i32, i32
  }
  func.func @transform_1(%arg0: i32) -> (i32, i32, i32) {
    %c0_i32 = arith.constant 0 : i32
    %c0_i32_0 = arith.constant 0 : i32
    %c0_i32_1 = arith.constant 0 : i32
    %c0_i32_2 = arith.constant 0 : i32
    return %c0_i32, %c0_i32_0, %c0_i32_1 : i32, i32, i32
  }
  func.func @transform_2(%arg0: i32) -> (i32, i32, i32) {
    %c0_i32 = arith.constant 0 : i32
    %c0_i32_0 = arith.constant 0 : i32
    %c0_i32_1 = arith.constant 0 : i32
    return %c0_i32, %arg0, %c0_i32_0 : i32, i32, i32
  }
  func.func @transform_3(%arg0: i32) -> (i32, i32, i32) {
    %c0_i32 = arith.constant 0 : i32
    %c0_i32_0 = arith.constant 0 : i32
    %c0_i32_1 = arith.constant 0 : i32
    return %c0_i32, %arg0, %c0_i32_0 : i32, i32, i32
  }
  func.func @transform_4(%arg0: i32) -> (i32, i32) {
    %c0_i32 = arith.constant 0 : i32
    %c0_i32_0 = arith.constant 0 : i32
    return %arg0, %c0_i32 : i32, i32
  }
  func.func @transform_5(%arg0: i32) -> (i32, i32) {
    %c0_i32 = arith.constant 0 : i32
    %c0_i32_0 = arith.constant 0 : i32
    return %arg0, %c0_i32 : i32, i32
  }
  func.func @transform_6(%arg0: i32) -> (i32, i32) {
    %c0_i32 = arith.constant 0 : i32
    %c0_i32_0 = arith.constant 0 : i32
    return %arg0, %c0_i32 : i32, i32
  }
  func.func @transform_7(%arg0: i32) -> (i32, i32) {
    %c0_i32 = arith.constant 0 : i32
    %c0_i32_0 = arith.constant 0 : i32
    %c0_i32_1 = arith.constant 0 : i32
    return %c0_i32, %c0_i32_0 : i32, i32
  }
  func.func @transform_8(%arg0: i32) -> (i32, i32, i32) {
    %c0_i32 = arith.constant 0 : i32
    %c0_i32_0 = arith.constant 0 : i32
    %c0_i32_1 = arith.constant 0 : i32
    return %c0_i32, %arg0, %c0_i32_0 : i32, i32, i32
  }
}

</mosaic_0001>

<bundles_post_ra>
// kernel: nonlocal_forward.1
= control target key start
LH: loop header
LB: loop body
LE: loop exit
PB: predicated region body
PF: predicated region fallthrough
CT: control target
= control target key end

     0   :  { %v102_v0 = vlaneseq  ;;  %v1015_v1 = vmov 0   ;;  %v1016_v2 = vmov 4   ;;  %vm114_vm0 = vcmask 523264   ;;  %s1025_s30 = smov 16   ;;  %s1026_s9 = smov 15   ;;  %s1709_s0 = inlined_call_operand.vmem [shape: f32[2,16,256], index: 0, kind: input, shape index: {}, may-alias: {0,3}]   ;;  %s1710_s1 = inlined_call_operand.vmem [shape: f32[2,16,64], index: 1, kind: input, shape index: {}, may-alias: {1,2}]   ;;  %s1711_s2 = inlined_call_operand.vmem [shape: f32[2,16,64], index: 2, kind: input, shape index: {}, may-alias: {1,2}]   ;;  %s1712_s3 = inlined_call_operand.vmem [shape: f32[2,16,256], index: 3, kind: input, shape index: {}, may-alias: {0,3}]   ;;  %s1713_s4 = inlined_call_operand.vmem [shape: f32[16,9], index: 4, kind: input, shape index: {}]   ;;  %s1714_s5 = inlined_call_operand.vmem [shape: f32[16,1], index: 5, kind: input, shape index: {}]   ;;  %s1715_s6 = inlined_call_operand.vmem [shape: f32[16,1], index: 6, kind: input, shape index: {}]   ;;  %s1716_s7 = inlined_call_operand.vmem [shape: f32[9,256], index: 7, kind: input, shape index: {}]   ;;  %s1717_s8 = inlined_call_operand.vmem [shape: f32[2,16,256], index: 8, kind: output, shape index: {}]  }
   0x1   :  { %996 = vset.pattern.permute.xlu1 %v1015_v1  ;;  %1001 = vset.pattern.permute.xlu0 %v1016_v2  ;;  %v69_v4 = vld [vmem:[%s1710_s1] sm:$0xff]  ;;  %v71_v7 = vld [vmem:[%s1710_s1 + $0x10] sm:$0xff]  ;;  %v99_v9 = vld [vmem:[%s1711_s2 + $0x8] sm:$0xff]  ;;  %v1017_v56 = vmov 1   ;;  %v1018_v57 = vmov 6   ;;  %v1019_v58 = vmov 2  }
   0x2   :  { %v1080_v3 = vshrl.u32 %v102_v0, 7  ;;  %v98_v8 = vld [vmem:[%s1711_s2] sm:$0xff]  ;;  %v101_v17 = vld [vmem:[%s1711_s2 + $0x18] sm:$0xff]  ;;  %v100_v18 = vld [vmem:[%s1711_s2 + $0x10] sm:$0xff]  ;;  %v1020_v59 = vmov 7   ;;  %v1021_v60 = vmov 8  }
   0x3   :  { %v1139_v54 = vld [vmem:[%s1713_s4 + $0x8] sm:$0xff]  ;;  %v1145_v55 = vld [vmem:[%s1713_s4] sm:$0xff]  ;;  %v1022_v61 = vmov 3   ;;  %v1023_v62 = vmov 5   ;;  %s1027_s10 = smov 1   ;;  %s1028_s11 = smov 127  }
   0x4   :  { %v1086_v5 = vsub.s32 1, %v1080_v3  ;;  %v1089_v6 = vsub.s32 0, %v1080_v3  ;;  %v1113_v22 = vsub.s32 2, %v1080_v3  ;;  %v1122_v33 = vsub.s32 3, %v1080_v3  ;;  %v27_v63 = vld [vmem:[%s1709_s0] sm:$0xff]  ;;  %s1029_s12 = smov 113  }
   0x5   :  { %s1030_s1 = smov 112   ;;  %s1031_s13 = smov 111  }
   0x6   :  { %v162_v10 = vrot.slane %v69_v4, %v1086_v5  ;;  %v105_v11 = vrot.slane %v69_v4, %v1089_v6  ;;  %v109_v12 = vrot.slane %v71_v7, %v1089_v6  ;;  %v166_v21 = vrot.slane %v71_v7, %v1086_v5 }
   0x7   :  { %v218_v27 = vrot.slane %v69_v4, %v1113_v22  ;;  %v222_v32 = vrot.slane %v71_v7, %v1113_v22  ;;  %v274_v38 = vrot.slane %v69_v4, %v1122_v33  ;;  %v278_v43 = vrot.slane %v71_v7, %v1122_v33 }
   0x8   :  { %v167_v13 = vmul.f32 %v162_v10, %v98_v8  ;;  %v110_v14 = vmul.f32 %v105_v11, %v98_v8  ;;  %v168_v15 = vmul.f32 %v162_v10, %v99_v9  ;;  %v111_v16 = vmul.f32 %v105_v11, %v99_v9 }
   0x9   :  { %v113_v25 = vmul.f32 %v109_v12, %v101_v17  ;;  %v112_v26 = vmul.f32 %v109_v12, %v100_v18  ;;  %v170_v30 = vmul.f32 %v166_v21, %v101_v17  ;;  %v169_v31 = vmul.f32 %v166_v21, %v100_v18 }
   0xa   :  { %v171_v19 = vsel %vm114_vm0, %v167_v13, 0.0  ;;  %v115_v20 = vsel %vm114_vm0, %v110_v14, 0.0  ;;  %v174_v23 = vsel %vm114_vm0, %v168_v15, 0.0  ;;  %v118_v24 = vsel %vm114_vm0, %v111_v16, 0.0 }
   0xb   :  { %172 = vadd.xlane.f32.xlu1 %v171_v19  ;;  %116 = vadd.xlane.f32.xlu0 %v115_v20  ;;  %v124_v28 = vsel %vm114_vm0, %v113_v25, 0.0  ;;  %v121_v29 = vsel %vm114_vm0, %v112_v26, 0.0  ;;  %v180_v34 = vsel %vm114_vm0, %v170_v30, 0.0  ;;  %v177_v35 = vsel %vm114_vm0, %v169_v31, 0.0  ;;  %v1181_v25 = vld [vmem:[%s1709_s0 + $0x20] sm:$0xff]  ;;  %v1186_v26 = vld [vmem:[%s1709_s0 + $0x28] sm:$0xff] }
   0xc   :  { %v224_v36 = vmul.f32 %v218_v27, %v99_v9  ;;  %v223_v37 = vmul.f32 %v218_v27, %v98_v8  ;;  %v226_v41 = vmul.f32 %v222_v32, %v101_v17  ;;  %v225_v42 = vmul.f32 %v222_v32, %v100_v18 }
   0xd   :  { %v280_v46 = vmul.f32 %v274_v38, %v99_v9  ;;  %v279_v47 = vmul.f32 %v274_v38, %v98_v8  ;;  %v282_v50 = vmul.f32 %v278_v43, %v101_v17  ;;  %v281_v51 = vmul.f32 %v278_v43, %v100_v18 }
   0xe   :  { %v230_v39 = vsel %vm114_vm0, %v224_v36, 0.0  ;;  %v227_v40 = vsel %vm114_vm0, %v223_v37, 0.0  ;;  %v236_v44 = vsel %vm114_vm0, %v226_v41, 0.0  ;;  %v233_v45 = vsel %vm114_vm0, %v225_v42, 0.0 }
   0xf   :  { %175 = vadd.xlane.f32.xlu1 %v174_v23  ;;  %119 = vadd.xlane.f32.xlu0 %v118_v24  ;;  %v286_v48 = vsel %vm114_vm0, %v280_v46, 0.0  ;;  %v283_v49 = vsel %vm114_vm0, %v279_v47, 0.0  ;;  %v292_v52 = vsel %vm114_vm0, %v282_v50, 0.0  ;;  %v289_v53 = vsel %vm114_vm0, %v281_v51, 0.0 }
  0x10   :  { %v186_v4 = vrot.slane %v27_v63, %v1086_v5  ;;  %v130_v8 = vrot.slane %v27_v63, %v1089_v6  ;;  %v138_v30 = vrot.slane %v1181_v25, %v1089_v6  ;;  %v142_v31 = vrot.slane %v1186_v26, %v1089_v6 }
  0x11   :  { %v242_v42 = vrot.slane %v27_v63, %v1113_v22 }
  0x13   :  { %125 = vadd.xlane.f32.xlu1 %v124_v28  ;;  %122 = vadd.xlane.f32.xlu0 %v121_v29 }
  0x17   :  { %181 = vadd.xlane.f32.xlu1 %v180_v34  ;;  %178 = vadd.xlane.f32.xlu0 %v177_v35  ;;  %v194_v34 = vrot.slane %v1181_v25, %v1086_v5  ;;  %v198_v35 = vrot.slane %v1186_v26, %v1086_v5 }
  0x1b   :  { %231 = vadd.xlane.f32.xlu1 %v230_v39  ;;  %228 = vadd.xlane.f32.xlu0 %v227_v40 }
  0x1f   :  { %237 = vadd.xlane.f32.xlu1 %v236_v44  ;;  %234 = vadd.xlane.f32.xlu0 %v233_v45 }
  0x23   :  { %287 = vadd.xlane.f32.xlu1 %v286_v48  ;;  %284 = vadd.xlane.f32.xlu0 %v283_v49 }
  0x27   :  { %293 = vadd.xlane.f32.xlu1 %v292_v52  ;;  %290 = vadd.xlane.f32.xlu0 %v289_v53 }
  0x38   :  { %367 = vperm.xlu1 %996, %v1139_v54  }
  0x3c   :  { %997 = vset.pattern.permute.xlu1 %v1017_v56  ;;  %v250_v56 = vrot.slane %v1181_v25, %v1113_v22 }
  0x3d   :  { %424 = vperm.xlu1 %997, %v1145_v55   ;;  %586 = vperm.xlu0 %1001, %v1139_v54  }
  0x41   :  { %428 = vperm.xlu1 %997, %v1139_v54   ;;  %1003 = vset.pattern.permute.xlu0 %v1018_v57 }
  0x42   :  { %692 = vperm.xlu0 %1003, %v1145_v55  }
  0x45   :  { %998 = vset.pattern.permute.xlu1 %v1019_v58 }
  0x46   :  { %485 = vperm.xlu1 %998, %v1145_v55   ;;  %1006 = vset.pattern.permute.xlu0 %v1020_v59 }
  0x47   :  { %757 = vperm.xlu0 %1006, %v1139_v54  }
  0x4a   :  { %489 = vperm.xlu1 %998, %v1139_v54  }
  0x4b   :  { %1007 = vset.pattern.permute.xlu0 %v1021_v60 }
  0x4c   :  { %814 = vperm.xlu0 %1007, %v1145_v55  }
  0x4e   :  { %999 = vset.pattern.permute.xlu1 %v1022_v61 }
  0x4f   :  { %546 = vperm.xlu1 %999, %v1145_v55  }
  0x50   :  { %1008 = vset.pattern.permute.xlu0 %v1015_v1 }
  0x53   :  { %550 = vperm.xlu1 %999, %v1139_v54  }
  0x57   :  { %1000 = vset.pattern.permute.xlu1 %v1016_v2  ;;  %v1170_v2 = vld [vmem:[%s1709_s0 + $0x8] sm:$0xff]  ;;  %s1024_s0 = smov 17  }
  0x58   :  { %582 = vperm.xlu1 %1000, %v1145_v55   ;;  %v190_v7 = vrot.slane %v1170_v2, %v1086_v5  ;;  %v134_v9 = vrot.slane %v1170_v2, %v1089_v6  ;;  %v246_v43 = vrot.slane %v1170_v2, %v1113_v22 }
  0x5c   :  { %1002 = vset.pattern.permute.xlu1 %v1023_v62 }
  0x5d   :  { %631 = vperm.xlu1 %1002, %v1145_v55  }
  0x61   :  { %635 = vperm.xlu1 %1002, %v1139_v54  }
  0x65   :  { %1004 = vset.pattern.permute.xlu1 %v1018_v57  ;;  %v254_v57 = vrot.slane %v1186_v26, %v1113_v22 }
  0x66   :  { %696 = vperm.xlu1 %1004, %v1139_v54  }
  0x6a   :  { %1005 = vset.pattern.permute.xlu1 %v1020_v59 }
  0x6b   :  { %753 = vperm.xlu1 %1005, %v1145_v55  }
  0x6f   :  { %1009 = vset.pattern.permute.xlu1 %v1021_v60 }
  0x98   :  { %v173_v10 = vpop.xlane.xlu1 %172  ;;  %v117_v11 = vpop.xlane.xlu0 %116 }
  0x99   :  { %v199_v12 = vmul.f32 %v186_v4, %v173_v10  ;;  %v200_v13 = vmul.f32 %v190_v7, %v173_v10  ;;  %v143_v14 = vmul.f32 %v130_v8, %v117_v11  ;;  %v144_v15 = vmul.f32 %v134_v9, %v117_v11 }
  0x9a   :  { %v298_v11 = vrot.slane %v27_v63, %v1122_v33 }
  0x9b   :  { %v207_v16 = vadd.f32 %v199_v12, %v143_v14  ;;  %v208_v17 = vadd.f32 %v200_v13, %v144_v15 }
  0x9c   :  { %v176_v18 = vpop.xlane.xlu1 %175  ;;  %v120_v19 = vpop.xlane.xlu0 %119 }
  0x9d   :  { %v201_v20 = vmul.f32 %v186_v4, %v176_v18  ;;  %v202_v21 = vmul.f32 %v190_v7, %v176_v18  ;;  %v145_v23 = vmul.f32 %v130_v8, %v120_v19  ;;  %v146_v24 = vmul.f32 %v134_v9, %v120_v19 }
  0x9e   :  { %v302_v18 = vrot.slane %v1170_v2, %v1122_v33 }
  0x9f   :  { %v209_v27 = vadd.f32 %v201_v20, %v145_v23  ;;  %v210_v28 = vadd.f32 %v202_v21, %v146_v24 }
  0xa0   :  { %v126_v29 = vpop.xlane.xlu1 %125  ;;  %v123_v32 = vpop.xlane.xlu0 %122 }
  0xa1   :  { %v149_v36 = vmul.f32 %v138_v30, %v126_v29  ;;  %v150_v37 = vmul.f32 %v142_v31, %v126_v29  ;;  %v147_v38 = vmul.f32 %v138_v30, %v123_v32  ;;  %v148_v39 = vmul.f32 %v142_v31, %v123_v32 }
  0xa4   :  { %v182_v40 = vpop.xlane.xlu1 %181  ;;  %v179_v41 = vpop.xlane.xlu0 %178 }
  0xa5   :  { %v205_v44 = vmul.f32 %v194_v34, %v182_v40  ;;  %v206_v45 = vmul.f32 %v198_v35, %v182_v40  ;;  %v203_v46 = vmul.f32 %v194_v34, %v179_v41  ;;  %v204_v47 = vmul.f32 %v198_v35, %v179_v41 }
  0xa6   :  { %v306_v35 = vrot.slane %v1181_v25, %v1122_v33  ;;  %v310_v41 = vrot.slane %v1186_v26, %v1122_v33 }
  0xa7   :  { %v213_v48 = vadd.f32 %v205_v44, %v149_v36  ;;  %v214_v49 = vadd.f32 %v206_v45, %v150_v37  ;;  %v211_v50 = vadd.f32 %v203_v46, %v147_v38  ;;  %v212_v51 = vadd.f32 %v204_v47, %v148_v39  ;;  %v1229_v37 = vld [vmem:[%s1716_s7] sm:$0xff]  ;;  %v1234_v38 = vld [vmem:[%s1716_s7 + $0x8] sm:$0xff] }
  0xa8   :  { %v232_v52 = vpop.xlane.xlu1 %231  ;;  %v229_v53 = vpop.xlane.xlu0 %228  ;;  %v1242_v25 = vrot.slane %v1229_v37, %v1086_v5  ;;  %v1246_v40 = vrot.slane %v1234_v38, %v1086_v5  ;;  %v495_v5 = vrot.slane %v1229_v37, %v1113_v22  ;;  %v499_v26 = vrot.slane %v1234_v38, %v1113_v22 }
  0xa9   :  { %v257_v58 = vmul.f32 %v242_v42, %v232_v52  ;;  %v258_v59 = vmul.f32 %v246_v43, %v232_v52  ;;  %v255_v60 = vmul.f32 %v242_v42, %v229_v53  ;;  %v256_v61 = vmul.f32 %v246_v43, %v229_v53 }
  0xab   :  { %v265_v62 = vadd.f32 %v257_v58, %v209_v27  ;;  %v266_v4 = vadd.f32 %v258_v59, %v210_v28  ;;  %v263_v7 = vadd.f32 %v255_v60, %v207_v16  ;;  %v264_v8 = vadd.f32 %v256_v61, %v208_v17 }
  0xac   :  { %v238_v9 = vpop.xlane.xlu1 %237  ;;  %v235_v10 = vpop.xlane.xlu0 %234 }
  0xad   :  { %v261_v12 = vmul.f32 %v250_v56, %v238_v9  ;;  %v262_v13 = vmul.f32 %v254_v57, %v238_v9  ;;  %v259_v14 = vmul.f32 %v250_v56, %v235_v10  ;;  %v260_v15 = vmul.f32 %v254_v57, %v235_v10 }
  0xaf   :  { %v269_v19 = vadd.f32 %v261_v12, %v213_v48  ;;  %v270_v20 = vadd.f32 %v262_v13, %v214_v49  ;;  %v267_v21 = vadd.f32 %v259_v14, %v211_v50  ;;  %v268_v23 = vadd.f32 %v260_v15, %v212_v51 }
  0xb0   :  { %v288_v24 = vpop.xlane.xlu1 %287  ;;  %v285_v27 = vpop.xlane.xlu0 %284  ;;  %v1369_v12 = vrot.slane %v1229_v37, %v1089_v6  ;;  %v1373_v13 = vrot.slane %v1234_v38, %v1089_v6 }
  0xb1   :  { %v313_v28 = vmul.f32 %v298_v11, %v288_v24  ;;  %v311_v16 = vmul.f32 %v298_v11, %v285_v27  ;;  %v314_v17 = vmul.f32 %v302_v18, %v288_v24  ;;  %v312_v63 = vmul.f32 %v302_v18, %v285_v27 }
  0xb2   :  { %v1364_v11 = vand.u32 127, %v102_v0 }
  0xb3   :  { %v1206_v29 = vadd.f32 %v313_v28, %v265_v62  ;;  %v1208_v30 = vadd.f32 %v311_v16, %v263_v7  ;;  %v1214_v2 = vadd.f32 %v314_v17, %v266_v4  ;;  %v1216_v32 = vadd.f32 %v312_v63, %v264_v8 }
  0xb4   :  { %v294_v31 = vpop.xlane.xlu1 %293  ;;  %v291_v36 = vpop.xlane.xlu0 %290  ;;  %vm351_vm1 = vcmp.lt.s32.totalorder %v1364_v11, 17  ;;  %vm414_vm2 = vcmp.lt.s32.totalorder %v1364_v11, 16  ;;  %vm475_vm3 = vcmp.lt.s32.totalorder %v1364_v11, 15  ;;  %vm536_vm4 = vcmp.lt.s32.totalorder %v1364_v11, 1 }
  0xb5   :  { %335 = vrot.lane.b32.xlu0 %v1206_v29, %s1024_s0  ;;  %333 = vrot.lane.b32.xlu1 %v1208_v30, %s1024_s0  ;;  %v315_v42 = vmul.f32 %v306_v35, %v291_v36  ;;  %v317_v43 = vmul.f32 %v306_v35, %v294_v31  ;;  %v316_v47 = vmul.f32 %v310_v41, %v291_v36  ;;  %vm621_vm5 = vcmp.lt.s32.totalorder %v1364_v11, 127 }
  0xb6   :  { %v318_v49 = vmul.f32 %v310_v41, %v294_v31  ;;  %vm682_vm6 = vcmp.lt.s32.totalorder %v1364_v11, 113  ;;  %vm743_vm7 = vcmp.lt.s32.totalorder %v1364_v11, 112  ;;  %vm804_vm8 = vcmp.lt.s32.totalorder %v1364_v11, 111 }
  0xb7   :  { %v1266_v48 = vadd.f32 %v315_v42, %v267_v21  ;;  %v1268_v50 = vadd.f32 %v317_v43, %v269_v19  ;;  %v1278_v56 = vadd.f32 %v316_v47, %v268_v23 }
  0xb8   :  { %v1218_v34 = vpop.permute.xlu1 %367  ;;  %v1280_v22 = vadd.f32 %v318_v49, %v270_v20 }
  0xb9   :  { %343 = vrot.lane.b32.xlu0 %v1214_v2, %s1024_s0  ;;  %341 = vrot.lane.b32.xlu1 %v1216_v32, %s1024_s0  ;;  %v380_v0 = vmul.f32 %v1369_v12, %v1218_v34  ;;  %v381_v18 = vmul.f32 %v1373_v13, %v1218_v34 }
  0xbc   :  { %v1236_v39 = vpop.permute.xlu1 %424  ;;  %v1337_v61 = vpop.permute.xlu0 %586 }
  0xbd   :  { %400 = vrot.lane.b32.xlu0 %v1206_v29, %s1025_s30  ;;  %398 = vrot.lane.b32.xlu1 %v1208_v30, %s1025_s30  ;;  %v439_v31 = vmul.f32 %v1242_v25, %v1236_v39  ;;  %v440_v34 = vmul.f32 %v1246_v40, %v1236_v39 }
  0xc0   :  { %v429_v44 = vpop.permute.xlu1 %428 }
  0xc1   :  { %408 = vrot.lane.b32.xlu0 %v1214_v2, %s1025_s30  ;;  %v1255_v45 = vmul.f32 %v1242_v25, %v429_v44  ;;  %v1258_v46 = vmul.f32 %v1246_v40, %v429_v44  ;;  %406 = vrot.lane.b32.xlu1 %v1216_v32, %s1025_s30  ;;  %v1342_v62 = vpop.permute.xlu0 %692 }
  0xc5   :  { %337 = vrot.lane.b32.xlu0 %v1266_v48, %s1024_s0  ;;  %v486_v51 = vpop.permute.xlu1 %485  ;;  %339 = vrot.lane.b32.xlu1 %v1268_v50, %s1024_s0 }
  0xc6   :  { %v1274_v52 = vmul.f32 %v495_v5, %v486_v51  ;;  %v1276_v53 = vmul.f32 %v499_v26, %v486_v51  ;;  %v1349_v7 = vpop.permute.xlu0 %757 }
  0xc9   :  { %345 = vrot.lane.b32.xlu0 %v1278_v56, %s1024_s0  ;;  %v490_v57 = vpop.permute.xlu1 %489  ;;  %347 = vrot.lane.b32.xlu1 %v1280_v22, %s1024_s0 }
  0xca   :  { %v1286_v58 = vmul.f32 %v495_v5, %v490_v57  ;;  %v1288_v59 = vmul.f32 %v499_v26, %v490_v57 }
  0xcb   :  { %v1356_v9 = vpop.permute.xlu0 %814 }
  0xcd   :  { %402 = vrot.lane.b32.xlu0 %v1266_v48, %s1025_s30  ;;  %404 = vrot.lane.b32.xlu1 %v1268_v50, %s1025_s30 }
  0xce   :  { %v1321_v60 = vpop.permute.xlu1 %546 }
  0xd1   :  { %410 = vrot.lane.b32.xlu0 %v1278_v56, %s1025_s30  ;;  %412 = vrot.lane.b32.xlu1 %v1280_v22, %s1025_s30 }
  0xd5   :  { %459 = vrot.lane.b32.xlu0 %v1208_v30, %s1026_s9  ;;  %461 = vrot.lane.b32.xlu1 %v1206_v29, %s1026_s9 }
  0xd9   :  { %467 = vrot.lane.b32.xlu0 %v1216_v32, %s1026_s9  ;;  %469 = vrot.lane.b32.xlu1 %v1214_v2, %s1026_s9 }
  0xdd   :  { %465 = vrot.lane.b32.xlu0 %v1268_v50, %s1026_s9  ;;  %463 = vrot.lane.b32.xlu1 %v1266_v48, %s1026_s9 }
  0xe1   :  { %473 = vrot.lane.b32.xlu0 %v1280_v22, %s1026_s9  ;;  %471 = vrot.lane.b32.xlu1 %v1278_v56, %s1026_s9 }
  0xe5   :  { %522 = vrot.lane.b32.xlu0 %v1206_v29, %s1027_s10  ;;  %520 = vrot.lane.b32.xlu1 %v1208_v30, %s1027_s10 }
  0xe9   :  { %530 = vrot.lane.b32.xlu0 %v1214_v2, %s1027_s10  ;;  %528 = vrot.lane.b32.xlu1 %v1216_v32, %s1027_s10 }
  0xed   :  { %532 = vrot.lane.b32.xlu0 %v1278_v56, %s1027_s10  ;;  %524 = vrot.lane.b32.xlu1 %v1266_v48, %s1027_s10 }
  0xf1   :  { %362 = vperm.xlu0 %1008, %v1145_v55   ;;  %526 = vrot.lane.b32.xlu1 %v1268_v50, %s1027_s10 }
  0xf5   :  { %607 = vrot.lane.b32.xlu0 %v1206_v29, %s1028_s11  ;;  %818 = vperm.xlu1 %1009, %v1139_v54   ;;  %v1326_v54 = vpop.permute.xlu1 %550 }
  0xf9   :  { %615 = vrot.lane.b32.xlu0 %v1214_v2, %s1028_s11  ;;  %534 = vrot.lane.b32.xlu1 %v1280_v22, %s1027_s10 }
  0xfa   :  { %1010 = vset.pattern.permute.xlu1 %v1015_v1  ;;  %v1331_v1 = vpop.permute.xlu1 %582 }
  0xfd   :  { %611 = vrot.lane.b32.xlu0 %v1268_v50, %s1028_s11  ;;  %605 = vrot.lane.b32.xlu1 %v1208_v30, %s1028_s11 }
  0xfe   :  { %v1335_v55 = vpop.permute.xlu1 %631 }
 0x101   :  { %619 = vrot.lane.b32.xlu0 %v1280_v22, %s1028_s11  ;;  %613 = vrot.lane.b32.xlu1 %v1216_v32, %s1028_s11 }
 0x102   :  { %v1345_v4 = vpop.permute.xlu1 %635 }
 0x105   :  { %668 = vrot.lane.b32.xlu0 %v1206_v29, %s1029_s12  ;;  %609 = vrot.lane.b32.xlu1 %v1266_v48, %s1028_s11 }
 0x106   :  { %v1351_v8 = vpop.permute.xlu1 %696 }
 0x109   :  { %676 = vrot.lane.b32.xlu0 %v1214_v2, %s1029_s12  ;;  %617 = vrot.lane.b32.xlu1 %v1278_v56, %s1028_s11 }
 0x10a   :  { %v1359_v10 = vpop.permute.xlu1 %753 }
 0x10d   :  { %672 = vrot.lane.b32.xlu0 %v1268_v50, %s1029_s12  ;;  %666 = vrot.lane.b32.xlu1 %v1208_v30, %s1029_s12 }
 0x111   :  { %680 = vrot.lane.b32.xlu0 %v1280_v22, %s1029_s12  ;;  %674 = vrot.lane.b32.xlu1 %v1216_v32, %s1029_s12 }
 0x115   :  { %729 = vrot.lane.b32.xlu0 %v1206_v29, %s1030_s1  ;;  %670 = vrot.lane.b32.xlu1 %v1266_v48, %s1029_s12 }
 0x119   :  { %737 = vrot.lane.b32.xlu0 %v1214_v2, %s1030_s1  ;;  %678 = vrot.lane.b32.xlu1 %v1278_v56, %s1029_s12 }
 0x11d   :  { %733 = vrot.lane.b32.xlu0 %v1268_v50, %s1030_s1  ;;  %727 = vrot.lane.b32.xlu1 %v1208_v30, %s1030_s1 }
 0x121   :  { %741 = vrot.lane.b32.xlu0 %v1280_v22, %s1030_s1  ;;  %735 = vrot.lane.b32.xlu1 %v1216_v32, %s1030_s1 }
 0x125   :  { %790 = vrot.lane.b32.xlu0 %v1206_v29, %s1031_s13  ;;  %731 = vrot.lane.b32.xlu1 %v1266_v48, %s1030_s1 }
 0x127   :  { %v336_v14 = vpop.permute.xlu0 %335  ;;  %v334_v15 = vpop.permute.xlu1 %333 }
 0x129   :  { %798 = vrot.lane.b32.xlu0 %v1214_v2, %s1031_s13  ;;  %739 = vrot.lane.b32.xlu1 %v1278_v56, %s1030_s1 }
 0x12b   :  { %v344_v19 = vpop.permute.xlu0 %343  ;;  %v342_v21 = vpop.permute.xlu1 %341 }
 0x12c   :  { %v353_v6 = vsel %vm351_vm1, %v336_v14, %v344_v19  ;;  %v357_v20 = vsel %vm351_vm1, %v344_v19, %v336_v14  ;;  %v1389_v27 = vsel %vm351_vm1, %v334_v15, %v342_v21  ;;  %v1393_v28 = vsel %vm351_vm1, %v342_v21, %v334_v15 }
 0x12d   :  { %v384_v23 = vmul.f32 %v380_v0, %v357_v20  ;;  %v385_v24 = vmul.f32 %v381_v18, %v353_v6  ;;  %794 = vrot.lane.b32.xlu0 %v1268_v50, %s1031_s13  ;;  %788 = vrot.lane.b32.xlu1 %v1208_v30, %s1031_s13 }
 0x12f   :  { %v401_v16 = vpop.permute.xlu0 %400  ;;  %v399_v17 = vpop.permute.xlu1 %398 }
 0x131   :  { %802 = vrot.lane.b32.xlu0 %v1280_v22, %s1031_s13  ;;  %796 = vrot.lane.b32.xlu1 %v1216_v32, %s1031_s13 }
 0x133   :  { %v409_v63 = vpop.permute.xlu0 %408  ;;  %v407_v41 = vpop.permute.xlu1 %406 }
 0x134   :  { %v416_v35 = vsel %vm414_vm2, %v401_v16, %v409_v63  ;;  %v420_v36 = vsel %vm414_vm2, %v409_v63, %v401_v16  ;;  %v415_v44 = vsel %vm414_vm2, %v399_v17, %v407_v41  ;;  %v419_v25 = vsel %vm414_vm2, %v407_v41, %v399_v17 }
 0x135   :  { %v445_v42 = vmul.f32 %v1255_v45, %v420_v36  ;;  %v446_v43 = vmul.f32 %v1258_v46, %v416_v35  ;;  %v1418_v5 = vmul.f32 %v439_v31, %v419_v25  ;;  %v1420_v39 = vmul.f32 %v440_v34, %v415_v44  ;;  %792 = vrot.lane.b32.xlu1 %v1266_v48, %s1031_s13 }
 0x137   :  { %v453_v40 = vadd.f32 %v445_v42, %v384_v23  ;;  %v454_v26 = vadd.f32 %v446_v43, %v385_v24  ;;  %v338_v47 = vpop.permute.xlu0 %337  ;;  %v340_v49 = vpop.permute.xlu1 %339 }
 0x139   :  { %800 = vrot.lane.b32.xlu1 %v1278_v56, %s1031_s13 }
 0x13b   :  { %v346_v51 = vpop.permute.xlu0 %345  ;;  %v348_v15 = vpop.permute.xlu1 %347 }
 0x13c   :  { %v1428_v57 = vsel %vm351_vm1, %v338_v47, %v346_v51  ;;  %v1432_v14 = vsel %vm351_vm1, %v346_v51, %v338_v47  ;;  %v355_v19 = vsel %vm351_vm1, %v340_v49, %v348_v15  ;;  %v359_v6 = vsel %vm351_vm1, %v348_v15, %v340_v49 }
 0x13d   :  { %v388_v20 = vmul.f32 %v380_v0, %v359_v6  ;;  %v389_v21 = vmul.f32 %v381_v18, %v355_v19 }
 0x13f   :  { %v403_v23 = vpop.permute.xlu0 %402  ;;  %v405_v24 = vpop.permute.xlu1 %404 }
 0x143   :  { %v411_v16 = vpop.permute.xlu0 %410  ;;  %v413_v35 = vpop.permute.xlu1 %412 }
 0x144   :  { %v417_v17 = vsel %vm414_vm2, %v403_v23, %v411_v16  ;;  %v421_v63 = vsel %vm414_vm2, %v411_v16, %v403_v23  ;;  %v418_v42 = vsel %vm414_vm2, %v405_v24, %v413_v35  ;;  %v422_v0 = vsel %vm414_vm2, %v413_v35, %v405_v24 }
 0x145   :  { %v1442_v36 = vmul.f32 %v439_v31, %v421_v63  ;;  %v1444_v41 = vmul.f32 %v440_v34, %v417_v17  ;;  %v449_v18 = vmul.f32 %v1255_v45, %v422_v0  ;;  %v450_v43 = vmul.f32 %v1258_v46, %v418_v42 }
 0x147   :  { %v460_v44 = vpop.permute.xlu0 %459  ;;  %v457_v25 = vadd.f32 %v449_v18, %v388_v20  ;;  %v458_v47 = vadd.f32 %v450_v43, %v389_v21  ;;  %v462_v49 = vpop.permute.xlu1 %461 }
 0x14b   :  { %v468_v31 = vpop.permute.xlu0 %467  ;;  %v470_v15 = vpop.permute.xlu1 %469 }
 0x14c   :  { %v476_v34 = vsel %vm475_vm3, %v460_v44, %v468_v31  ;;  %v480_v51 = vsel %vm475_vm3, %v468_v31, %v460_v44  ;;  %v477_v46 = vsel %vm475_vm3, %v462_v49, %v470_v15  ;;  %v481_v6 = vsel %vm475_vm3, %v470_v15, %v462_v49 }
 0x14d   :  { %v1458_v19 = vmul.f32 %v1274_v52, %v480_v51  ;;  %v1461_v45 = vmul.f32 %v1276_v53, %v476_v34  ;;  %v506_v20 = vmul.f32 %v1286_v58, %v481_v6  ;;  %v507_v21 = vmul.f32 %v1288_v59, %v477_v46 }
 0x14e   :  { %v556_v31 = vrot.slane %v1229_v37, %v1122_v33  ;;  %v560_v34 = vrot.slane %v1234_v38, %v1122_v33 }
 0x14f   :  { %v466_v23 = vpop.permute.xlu0 %465  ;;  %v514_v24 = vadd.f32 %v506_v20, %v453_v40  ;;  %v515_v16 = vadd.f32 %v507_v21, %v454_v26  ;;  %v464_v17 = vpop.permute.xlu1 %463 }
 0x150   :  { %v1491_v46 = vmul.f32 %v556_v31, %v1326_v54  ;;  %v561_v6 = vmul.f32 %v556_v31, %v1321_v60  ;;  %v562_v20 = vmul.f32 %v560_v34, %v1321_v60  ;;  %v591_v60 = vmul.f32 %v1337_v61, %v1206_v29 }
 0x153   :  { %v474_v63 = vpop.permute.xlu0 %473  ;;  %v472_v0 = vpop.permute.xlu1 %471 }
 0x154   :  { %v479_v35 = vsel %vm475_vm3, %v466_v23, %v474_v63  ;;  %v483_v42 = vsel %vm475_vm3, %v474_v63, %v466_v23  ;;  %v478_v44 = vsel %vm475_vm3, %v464_v17, %v472_v0  ;;  %v482_v40 = vsel %vm475_vm3, %v472_v0, %v464_v17 }
 0x155   :  { %v510_v18 = vmul.f32 %v1286_v58, %v483_v42  ;;  %v511_v43 = vmul.f32 %v1288_v59, %v479_v35  ;;  %v508_v26 = vmul.f32 %v1274_v52, %v482_v40  ;;  %v509_v49 = vmul.f32 %v1276_v53, %v478_v44 }
 0x156   :  { %v1494_v52 = vmul.f32 %v560_v34, %v1326_v54  ;;  %v592_v42 = vmul.f32 %v1337_v61, %v1214_v2 }
 0x157   :  { %v1485_v51 = vadd.f32 %v510_v18, %v457_v25  ;;  %v1487_v58 = vadd.f32 %v511_v43, %v458_v47  ;;  %v523_v59 = vpop.permute.xlu0 %522  ;;  %v521_v15 = vpop.permute.xlu1 %520 }
 0x15b   :  { %v531_v53 = vpop.permute.xlu0 %530  ;;  %v529_v47 = vpop.permute.xlu1 %528 }
 0x15c   :  { %v538_v33 = vsel %vm536_vm4, %v523_v59, %v531_v53  ;;  %v542_v25 = vsel %vm536_vm4, %v531_v53, %v523_v59  ;;  %v537_v54 = vsel %vm536_vm4, %v521_v15, %v529_v47  ;;  %v541_v17 = vsel %vm536_vm4, %v529_v47, %v521_v15 }
 0x15d   :  { %v567_v21 = vmul.f32 %v1491_v46, %v542_v25  ;;  %v568_v23 = vmul.f32 %v1494_v52, %v538_v33  ;;  %v565_v63 = vmul.f32 %v561_v6, %v541_v17  ;;  %v566_v35 = vmul.f32 %v562_v20, %v537_v54 }
 0x15e   :  { %v640_v33 = vsub.s32 5, %v1080_v3 }
 0x15f   :  { %v575_v0 = vadd.f32 %v567_v21, %v514_v24  ;;  %v576_v18 = vadd.f32 %v568_v23, %v515_v16  ;;  %v533_v43 = vpop.permute.xlu0 %532  ;;  %v525_v44 = vpop.permute.xlu1 %524 }
 0x160   :  { %v539_v40 = vsel %vm536_vm4, %v525_v44, %v533_v43  ;;  %v543_v31 = vsel %vm536_vm4, %v533_v43, %v525_v44  ;;  %v641_v54 = vrot.slane %v1229_v37, %v640_v33 }
 0x161   :  { %v599_v34 = vadd.f32 %v591_v60, %v575_v0  ;;  %v600_v59 = vadd.f32 %v592_v42, %v576_v18  ;;  %v569_v15 = vmul.f32 %v561_v6, %v543_v31  ;;  %v570_v53 = vmul.f32 %v562_v20, %v539_v40 }
 0x162   :  { %v645_v6 = vrot.slane %v1234_v38, %v640_v33  ;;  %v648_v0 = vmul.f32 %v641_v54, %v1345_v4 }
 0x163   :  { %v527_v25 = vpop.permute.xlu1 %526 }
 0x170   :  { %v363_v29 = vpop.permute.xlu0 %362 }
 0x171   :  { %v378_v2 = vmul.f32 %v1369_v12, %v363_v29  ;;  %v379_v24 = vmul.f32 %v1373_v13, %v363_v29 }
 0x173   :  { %v382_v16 = vmul.f32 %v378_v2, %v1393_v28  ;;  %v383_v47 = vmul.f32 %v379_v24, %v1389_v27  ;;  %v386_v21 = vmul.f32 %v378_v2, %v1432_v14  ;;  %v387_v23 = vmul.f32 %v379_v24, %v1428_v57 }
 0x174   :  { %v608_v20 = vpop.permute.xlu0 %607  ;;  %v1529_v28 = vpop.permute.xlu1 %818  ;;  %v589_v27 = vmul.f32 %v1331_v1, %v1208_v30  ;;  %v590_v57 = vmul.f32 %v1331_v1, %v1216_v32  ;;  %v649_v30 = vmul.f32 %v645_v6, %v1345_v4 }
 0x175   :  { %v451_v17 = vadd.f32 %v1418_v5, %v382_v16  ;;  %v452_v60 = vadd.f32 %v1420_v39, %v383_v47  ;;  %v455_v12 = vadd.f32 %v1442_v36, %v386_v21  ;;  %v456_v13 = vadd.f32 %v1444_v41, %v387_v23 }
 0x176   :  { %v593_v36 = vmul.f32 %v1331_v1, %v1266_v48  ;;  %v594_v41 = vmul.f32 %v1331_v1, %v1278_v56  ;;  %v596_v16 = vmul.f32 %v1337_v61, %v1280_v22 }
 0x177   :  { %v512_v14 = vadd.f32 %v1458_v19, %v451_v17  ;;  %v513_v5 = vadd.f32 %v1461_v45, %v452_v60  ;;  %v516_v42 = vadd.f32 %v508_v26, %v455_v12  ;;  %v517_v39 = vadd.f32 %v509_v49, %v456_v13 }
 0x178   :  { %v616_v18 = vpop.permute.xlu0 %615  ;;  %v535_v45 = vpop.permute.xlu1 %534 }
 0x179   :  { %v623_v32 = vsel %vm621_vm5, %v608_v20, %v616_v18  ;;  %v627_v19 = vsel %vm621_vm5, %v616_v18, %v608_v20  ;;  %v573_v26 = vadd.f32 %v565_v63, %v512_v14  ;;  %v574_v49 = vadd.f32 %v566_v35, %v513_v5 }
 0x17a   :  { %v652_v43 = vmul.f32 %v648_v0, %v623_v32  ;;  %v653_v44 = vmul.f32 %v649_v30, %v627_v19  ;;  %v540_v48 = vsel %vm536_vm4, %v527_v25, %v535_v45  ;;  %v544_v56 = vsel %vm536_vm4, %v535_v45, %v527_v25 }
 0x17b   :  { %v571_v1 = vmul.f32 %v1491_v46, %v544_v56  ;;  %v572_v4 = vmul.f32 %v1494_v52, %v540_v48  ;;  %v598_v40 = vadd.f32 %v590_v57, %v574_v49  ;;  %v597_v31 = vadd.f32 %v589_v27, %v573_v26 }
 0x17c   :  { %v660_v33 = vadd.f32 %v652_v43, %v599_v34  ;;  %v661_v29 = vadd.f32 %v653_v44, %v600_v59  ;;  %v612_v2 = vpop.permute.xlu0 %611  ;;  %v577_v24 = vadd.f32 %v569_v15, %v516_v42  ;;  %v578_v63 = vadd.f32 %v570_v53, %v517_v39  ;;  %v606_v46 = vpop.permute.xlu1 %605 }
 0x17d   :  { %v595_v35 = vmul.f32 %v1337_v61, %v1268_v50  ;;  %v579_v47 = vadd.f32 %v571_v1, %v1485_v51  ;;  %v580_v25 = vadd.f32 %v572_v4, %v1487_v58  ;;  %v701_v34 = vsub.s32 6, %v1080_v3 }
 0x17e   :  { %v601_v21 = vadd.f32 %v593_v36, %v577_v24  ;;  %v602_v52 = vadd.f32 %v594_v41, %v578_v63  ;;  %v646_v15 = vmul.f32 %v641_v54, %v1335_v55  ;;  %v647_v53 = vmul.f32 %v645_v6, %v1335_v55 }
 0x17f   :  { %v603_v23 = vadd.f32 %v595_v35, %v579_v47  ;;  %v604_v20 = vadd.f32 %v596_v16, %v580_v25  ;;  %v702_v54 = vrot.slane %v1229_v37, %v701_v34  ;;  %v706_v55 = vrot.slane %v1234_v38, %v701_v34 }
 0x180   :  { %v620_v59 = vpop.permute.xlu0 %619  ;;  %v614_v61 = vpop.permute.xlu1 %613 }
 0x181   :  { %v625_v50 = vsel %vm621_vm5, %v612_v2, %v620_v59  ;;  %v629_v22 = vsel %vm621_vm5, %v620_v59, %v612_v2  ;;  %v622_v17 = vsel %vm621_vm5, %v606_v46, %v614_v61  ;;  %v626_v60 = vsel %vm621_vm5, %v614_v61, %v606_v46 }
 0x182   :  { %v656_v51 = vmul.f32 %v648_v0, %v625_v50  ;;  %v657_v58 = vmul.f32 %v649_v30, %v629_v22  ;;  %v650_v12 = vmul.f32 %v646_v15, %v622_v17  ;;  %v651_v13 = vmul.f32 %v647_v53, %v626_v60 }
 0x183   :  { %v709_v39 = vmul.f32 %v702_v54, %v1351_v8  ;;  %v710_v36 = vmul.f32 %v706_v55, %v1351_v8  ;;  %v707_v2 = vmul.f32 %v702_v54, %v1342_v62  ;;  %v708_v24 = vmul.f32 %v706_v55, %v1342_v62 }
 0x184   :  { %v664_v6 = vadd.f32 %v656_v51, %v603_v23  ;;  %v665_v27 = vadd.f32 %v657_v58, %v604_v20  ;;  %v669_v57 = vpop.permute.xlu0 %668  ;;  %v658_v14 = vadd.f32 %v650_v12, %v597_v31  ;;  %v659_v5 = vadd.f32 %v651_v13, %v598_v40  ;;  %v610_v42 = vpop.permute.xlu1 %609 }
 0x185   :  { %v762_v40 = vsub.s32 7, %v1080_v3 }
 0x187   :  { %v763_v59 = vrot.slane %v1229_v37, %v762_v40 }
 0x188   :  { %v677_v41 = vpop.permute.xlu0 %676  ;;  %v618_v18 = vpop.permute.xlu1 %617 }
 0x189   :  { %v684_v0 = vsel %vm682_vm6, %v669_v57, %v677_v41  ;;  %v688_v30 = vsel %vm682_vm6, %v677_v41, %v669_v57  ;;  %v624_v45 = vsel %vm621_vm5, %v610_v42, %v618_v18  ;;  %v628_v26 = vsel %vm621_vm5, %v618_v18, %v610_v42 }
 0x18a   :  { %v713_v32 = vmul.f32 %v709_v39, %v684_v0  ;;  %v714_v19 = vmul.f32 %v710_v36, %v688_v30  ;;  %v654_v49 = vmul.f32 %v646_v15, %v624_v45  ;;  %v655_v43 = vmul.f32 %v647_v53, %v628_v26 }
 0x18b   :  { %v767_v15 = vrot.slane %v1234_v38, %v762_v40  ;;  %v770_v53 = vmul.f32 %v763_v59, %v1349_v7 }
 0x18c   :  { %v721_v44 = vadd.f32 %v713_v32, %v660_v33  ;;  %v722_v8 = vadd.f32 %v714_v19, %v661_v29  ;;  %v673_v48 = vpop.permute.xlu0 %672  ;;  %v662_v56 = vadd.f32 %v654_v49, %v601_v21  ;;  %v663_v1 = vadd.f32 %v655_v43, %v602_v52  ;;  %v667_v4 = vpop.permute.xlu1 %666 }
 0x18d   :  { %v771_v50 = vmul.f32 %v767_v15, %v1349_v7  ;;  %v769_v42 = vmul.f32 %v767_v15, %v1359_v10 }
 0x190   :  { %v681_v31 = vpop.permute.xlu0 %680  ;;  %v675_v16 = vpop.permute.xlu1 %674 }
 0x191   :  { %v686_v63 = vsel %vm682_vm6, %v673_v48, %v681_v31  ;;  %v690_v35 = vsel %vm682_vm6, %v681_v31, %v673_v48  ;;  %v683_v47 = vsel %vm682_vm6, %v667_v4, %v675_v16  ;;  %v687_v3 = vsel %vm682_vm6, %v675_v16, %v667_v4 }
 0x192   :  { %v717_v33 = vmul.f32 %v709_v39, %v686_v63  ;;  %v718_v29 = vmul.f32 %v710_v36, %v690_v35  ;;  %v711_v25 = vmul.f32 %v707_v2, %v683_v47  ;;  %v712_v46 = vmul.f32 %v708_v24, %v687_v3 }
 0x194   :  { %v725_v21 = vadd.f32 %v717_v33, %v664_v6  ;;  %v726_v52 = vadd.f32 %v718_v29, %v665_v27  ;;  %v730_v62 = vpop.permute.xlu0 %729  ;;  %v719_v23 = vadd.f32 %v711_v25, %v658_v14  ;;  %v720_v20 = vadd.f32 %v712_v46, %v659_v5  ;;  %v671_v34 = vpop.permute.xlu1 %670 }
 0x195   :  { %v768_v5 = vmul.f32 %v763_v59, %v1359_v10 }
 0x198   :  { %v738_v22 = vpop.permute.xlu0 %737  ;;  %v679_v58 = vpop.permute.xlu1 %678 }
 0x199   :  { %v745_v61 = vsel %vm743_vm7, %v730_v62, %v738_v22  ;;  %v749_v51 = vsel %vm743_vm7, %v738_v22, %v730_v62  ;;  %v685_v37 = vsel %vm682_vm6, %v671_v34, %v679_v58  ;;  %v689_v38 = vsel %vm682_vm6, %v679_v58, %v671_v34 }
 0x19a   :  { %v774_v17 = vmul.f32 %v770_v53, %v745_v61  ;;  %v775_v60 = vmul.f32 %v771_v50, %v749_v51  ;;  %v715_v12 = vmul.f32 %v707_v2, %v685_v37  ;;  %v716_v13 = vmul.f32 %v708_v24, %v689_v38 }
 0x19c   :  { %v782_v54 = vadd.f32 %v774_v17, %v721_v44  ;;  %v783_v7 = vadd.f32 %v775_v60, %v722_v8  ;;  %v734_v55 = vpop.permute.xlu0 %733  ;;  %v723_v6 = vadd.f32 %v715_v12, %v662_v56  ;;  %v724_v27 = vadd.f32 %v716_v13, %v663_v1  ;;  %v728_v57 = vpop.permute.xlu1 %727  ;;  %v977_v56 = vld [vmem:[%s1716_s7 + $0x10] ss:$0 sm:$0xff]  ;;  %v978_v1 = vld [vmem:[%s1716_s7 + $0x18] ss:$0 sm:$0xff] }
 0x19d   :  { %v831_v2 = vmul.f32 %v977_v56, %v1529_v28  ;;  %v832_v24 = vmul.f32 %v978_v1, %v1529_v28  ;;  %v829_v22 = vmul.f32 %v977_v56, %v1356_v9  ;;  %v830_v61 = vmul.f32 %v978_v1, %v1356_v9 }
 0x1a0   :  { %v742_v14 = vpop.permute.xlu0 %741  ;;  %v736_v41 = vpop.permute.xlu1 %735 }
 0x1a1   :  { %v747_v39 = vsel %vm743_vm7, %v734_v55, %v742_v14  ;;  %v751_v36 = vsel %vm743_vm7, %v742_v14, %v734_v55  ;;  %v744_v18 = vsel %vm743_vm7, %v728_v57, %v736_v41  ;;  %v748_v32 = vsel %vm743_vm7, %v736_v41, %v728_v57  ;;  %v894_v41 = vld [vmem:[%s1714_s5 + $0x8] sm:$0xff] }
 0x1a2   :  { %v778_v0 = vmul.f32 %v770_v53, %v747_v39  ;;  %v779_v30 = vmul.f32 %v771_v50, %v751_v36  ;;  %v772_v19 = vmul.f32 %v768_v5, %v744_v18  ;;  %v773_v45 = vmul.f32 %v769_v42, %v748_v32 }
 0x1a4   :  { %v786_v26 = vadd.f32 %v778_v0, %v725_v21  ;;  %v787_v49 = vadd.f32 %v779_v30, %v726_v52  ;;  %v791_v10 = vpop.permute.xlu0 %790  ;;  %v780_v43 = vadd.f32 %v772_v19, %v719_v23  ;;  %v781_v44 = vadd.f32 %v773_v45, %v720_v20  ;;  %v732_v8 = vpop.permute.xlu1 %731  ;;  %v895_v0 = vld [vmem:[%s1715_s6] sm:$0xff] }
 0x1a8   :  { %v799_v48 = vpop.permute.xlu0 %798  ;;  %v740_v31 = vpop.permute.xlu1 %739 }
 0x1a9   :  { %v806_v4 = vsel %vm804_vm8, %v791_v10, %v799_v48  ;;  %v810_v40 = vsel %vm804_vm8, %v799_v48, %v791_v10  ;;  %v746_v63 = vsel %vm743_vm7, %v732_v8, %v740_v31  ;;  %v750_v35 = vsel %vm743_vm7, %v740_v31, %v732_v8 }
 0x1aa   :  { %v776_v16 = vmul.f32 %v768_v5, %v746_v63  ;;  %v777_v33 = vmul.f32 %v769_v42, %v750_v35  ;;  %v835_v29 = vmul.f32 %v831_v2, %v806_v4  ;;  %v836_v47 = vmul.f32 %v832_v24, %v810_v40 }
 0x1ac   :  { %v795_v3 = vpop.permute.xlu0 %794  ;;  %v784_v25 = vadd.f32 %v776_v16, %v723_v6  ;;  %v785_v46 = vadd.f32 %v777_v33, %v724_v27  ;;  %v789_v21 = vpop.permute.xlu1 %788  ;;  %v843_v52 = vadd.f32 %v835_v29, %v782_v54  ;;  %v844_v62 = vadd.f32 %v836_v47, %v783_v7 }
 0x1ae   :  { %v854_v58 = vadd.f32 %v844_v62, %v843_v52 }
 0x1b0   :  { %v803_v23 = vpop.permute.xlu0 %802  ;;  %v797_v34 = vpop.permute.xlu1 %796 }
 0x1b1   :  { %v808_v28 = vsel %vm804_vm8, %v795_v3, %v803_v23  ;;  %v812_v20 = vsel %vm804_vm8, %v803_v23, %v795_v3  ;;  %v805_v53 = vsel %vm804_vm8, %v789_v21, %v797_v34  ;;  %v809_v50 = vsel %vm804_vm8, %v797_v34, %v789_v21  ;;  %v896_v3 = vld [vmem:[%s1715_s6 + $0x8] sm:$0xff] }
 0x1b2   :  { %v839_v59 = vmul.f32 %v831_v2, %v808_v28  ;;  %v840_v15 = vmul.f32 %v832_v24, %v812_v20  ;;  %v833_v17 = vmul.f32 %v829_v22, %v805_v53  ;;  %v834_v60 = vmul.f32 %v830_v61, %v809_v50 }
 0x1b4   :  { %v847_v51 = vadd.f32 %v839_v59, %v786_v26  ;;  %v793_v37 = vpop.permute.xlu1 %792  ;;  %v848_v38 = vadd.f32 %v840_v15, %v787_v49  ;;  %v841_v54 = vadd.f32 %v833_v17, %v780_v43  ;;  %v842_v7 = vadd.f32 %v834_v60, %v781_v44 }
 0x1b6   :  { %v855_v12 = vadd.f32 %v854_v58, %v847_v51  ;;  %v849_v14 = vadd.f32 %v842_v7, %v841_v54 }
 0x1b8   :  { %v856_v13 = vadd.f32 %v855_v12, %v848_v38  ;;  %v801_v55 = vpop.permute.xlu1 %800  ;;  %v904_v12 = vld [vmem:[%s1712_s3 + $0x38] sm:$0xff] }
 0x1b9   :  { %v807_v6 = vsel %vm804_vm8, %v793_v37, %v801_v55  ;;  %v811_v27 = vsel %vm804_vm8, %v801_v55, %v793_v37  ;;  %v900_v37 = vld [vmem:[%s1712_s3 + $0x18] sm:$0xff] }
 0x1ba   :  { %857 = vadd.xlane.f32.xlu0 %v856_v13  ;;  %v837_v57 = vmul.f32 %v829_v22, %v807_v6  ;;  %v838_v9 = vmul.f32 %v830_v61, %v811_v27  ;;  %v899_v61 = vld [vmem:[%s1712_s3 + $0x10] sm:$0xff] }
 0x1bc   :  { %v845_v5 = vadd.f32 %v837_v57, %v784_v25  ;;  %v846_v42 = vadd.f32 %v838_v9, %v785_v46  ;;  %v893_v25 = vld [vmem:[%s1714_s5] sm:$0xff] }
 0x1be   :  { %v850_v39 = vadd.f32 %v849_v14, %v845_v5 }
 0x1c0   :  { %v851_v36 = vadd.f32 %v850_v39, %v846_v42 }
 0x1c2   :  { %852 = vadd.xlane.f32.xlu1 %v851_v36 }
 0x1d3   :  { %920 = vperm.xlu1 %1010, %v894_v41  }
 0x1d7   :  { %933 = vperm.xlu1 %1010, %v895_v0  }
 0x247   :  { %v858_v11 = vpop.xlane.xlu0 %857 }
 0x248   :  { %v860_v30 = vmul.f32 0.001953125, %v858_v11  ;;  %v897_v11 = vld [vmem:[%s1712_s3] sm:$0xff] }
 0x24a   :  { %v863_v18 = vsub.f32 %v843_v52, %v860_v30  ;;  %v864_v32 = vsub.f32 %v844_v62, %v860_v30  ;;  %v867_v19 = vsub.f32 %v847_v51, %v860_v30  ;;  %v868_v45 = vsub.f32 %v848_v38, %v860_v30  ;;  %v903_v38 = vld [vmem:[%s1712_s3 + $0x30] sm:$0xff] }
 0x24c   :  { %v871_v26 = vmul.f32 %v863_v18, %v863_v18  ;;  %v872_v49 = vmul.f32 %v864_v32, %v864_v32  ;;  %v875_v10 = vmul.f32 %v867_v19, %v867_v19  ;;  %v876_v8 = vmul.f32 %v868_v45, %v868_v45 }
 0x24e   :  { %v882_v43 = vadd.f32 %v872_v49, %v871_v26  ;;  %v901_v26 = vld [vmem:[%s1712_s3 + $0x20] sm:$0xff]  ;;  %v902_v49 = vld [vmem:[%s1712_s3 + $0x28] sm:$0xff] }
 0x24f   :  { %v853_v44 = vpop.xlane.xlu1 %852 }
 0x250   :  { %v883_v48 = vadd.f32 %v882_v43, %v875_v10  ;;  %v859_v56 = vmul.f32 0.001953125, %v853_v44 }
 0x252   :  { %v884_v1 = vadd.f32 %v883_v48, %v876_v8  ;;  %v861_v4 = vsub.f32 %v841_v54, %v859_v56  ;;  %v862_v40 = vsub.f32 %v842_v7, %v859_v56  ;;  %v865_v31 = vsub.f32 %v845_v5, %v859_v56 }
 0x253   :  { %v866_v2 = vsub.f32 %v846_v42, %v859_v56  ;;  %v921_v46 = vpop.permute.xlu1 %920 }
 0x254   :  { %885 = vadd.xlane.f32.xlu1 %v884_v1  ;;  %v869_v24 = vmul.f32 %v861_v4, %v861_v4  ;;  %v870_v63 = vmul.f32 %v862_v40, %v862_v40  ;;  %v873_v35 = vmul.f32 %v865_v31, %v865_v31 }
 0x255   :  { %v874_v33 = vmul.f32 %v866_v2, %v866_v2 }
 0x256   :  { %v877_v16 = vadd.f32 %v870_v63, %v869_v24 }
 0x257   :  { %v934_v21 = vpop.permute.xlu1 %933 }
 0x258   :  { %v878_v29 = vadd.f32 %v877_v16, %v873_v35 }
 0x25a   :  { %v879_v47 = vadd.f32 %v878_v29, %v874_v33 }
 0x25c   :  { %880 = vadd.xlane.f32.xlu0 %v879_v47 }
 0x265   :  { %938 = vperm.xlu1 %1010, %v896_v3  }
 0x272   :  { %915 = vperm.xlu0 %1008, %v893_v25  }
 0x2e1   :  { %v886_v52 = vpop.xlane.xlu1 %885 }
 0x2e2   :  { %v888_v62 = vmul.f32 0.001953125, %v886_v52 }
 0x2e4   :  { %v890_v23 = vadd.f32 1e-05, %v888_v62 }
 0x2e5   :  { %v939_v13 = vpop.permute.xlu1 %938 }
 0x2e6   :  { %1011 = vrsqrt.f32 %v890_v23 }
 0x2e9   :  { %v881_v28 = vpop.xlane.xlu0 %880 }
 0x2ea   :  { %v887_v20 = vmul.f32 0.001953125, %v881_v28 }
 0x2ec   :  { %v889_v34 = vadd.f32 1e-05, %v887_v20 }
 0x2ee   :  { %1013 = vrsqrt.f32 %v889_v34 }
 0x2f0   :  { %v1012_v59 = vpop.eup %1011 }
 0x2f1   :  { %v907_v15 = vmul.f32 %v1012_v59, %v863_v18  ;;  %v908_v53 = vmul.f32 %v1012_v59, %v864_v32  ;;  %v911_v50 = vmul.f32 %v1012_v59, %v867_v19  ;;  %v912_v22 = vmul.f32 %v1012_v59, %v868_v45  ;;  %v916_v0 = vpop.permute.xlu0 %915  ;;  %v898_v45 = vld [vmem:[%s1712_s3 + $0x8] sm:$0xff] }
 0x2f3   :  { %v925_v51 = vmul.f32 %v921_v46, %v907_v15  ;;  %v926_v58 = vmul.f32 %v921_v46, %v908_v53  ;;  %v929_v17 = vmul.f32 %v921_v46, %v911_v50  ;;  %v930_v60 = vmul.f32 %v921_v46, %v912_v22 }
 0x2f5   :  { %v943_v54 = vadd.f32 %v939_v13, %v925_v51  ;;  %v944_v7 = vadd.f32 %v939_v13, %v926_v58  ;;  %v947_v55 = vadd.f32 %v939_v13, %v929_v17  ;;  %v948_v6 = vadd.f32 %v939_v13, %v930_v60 }
 0x2f7   :  { %v951_v27 = vadd.f32 %v943_v54, %v899_v61  ;;  %v952_v57 = vadd.f32 %v944_v7, %v900_v37  ;;  %v955_v9 = vadd.f32 %v947_v55, %v903_v38  ;;  %v956_v14 = vadd.f32 %v948_v6, %v904_v12 }
 0x2f8   :  { %v1014_v5 = vpop.eup %1013 }
 0x2f9   :  { %959 = vst [vmem:[%s1717_s8 + $0x10] sm:$0xff] %v951_v27  ;;  %960 = vst [vmem:[%s1717_s8 + $0x18] sm:$0xff] %v952_v57  ;;  %v905_v42 = vmul.f32 %v1014_v5, %v861_v4  ;;  %v906_v39 = vmul.f32 %v1014_v5, %v862_v40  ;;  %v909_v36 = vmul.f32 %v1014_v5, %v865_v31 }
 0x2fa   :  { %963 = vst [vmem:[%s1717_s8 + $0x30] sm:$0xff] %v955_v9  ;;  %964 = vst [vmem:[%s1717_s8 + $0x38] sm:$0xff] %v956_v14  ;;  %v910_v41 = vmul.f32 %v1014_v5, %v866_v2 }
 0x2fb   :  { %v923_v30 = vmul.f32 %v916_v0, %v905_v42  ;;  %v924_v18 = vmul.f32 %v916_v0, %v906_v39  ;;  %v927_v32 = vmul.f32 %v916_v0, %v909_v36 }
 0x2fc   :  { %v928_v19 = vmul.f32 %v916_v0, %v910_v41 }
 0x2fd   :  { %v941_v10 = vadd.f32 %v934_v21, %v923_v30  ;;  %v942_v43 = vadd.f32 %v934_v21, %v924_v18  ;;  %v945_v44 = vadd.f32 %v934_v21, %v927_v32 }
 0x2fe   :  { %v946_v8 = vadd.f32 %v934_v21, %v928_v19 }
 0x2ff   :  { %v949_v48 = vadd.f32 %v941_v10, %v897_v11  ;;  %v950_v56 = vadd.f32 %v942_v43, %v898_v45  ;;  %v953_v1 = vadd.f32 %v945_v44, %v901_v26 }
 0x300   :  { %v954_v4 = vadd.f32 %v946_v8, %v902_v49 }
 0x301   :  { %957 = vst [vmem:[%s1717_s8] sm:$0xff] %v949_v48  ;;  %958 = vst [vmem:[%s1717_s8 + $0x8] sm:$0xff] %v950_v56 }
 0x302   :  { %961 = vst [vmem:[%s1717_s8 + $0x20] sm:$0xff] %v953_v1  ;;  %962 = vst [vmem:[%s1717_s8 + $0x28] sm:$0xff] %v954_v4 }

</bundles_post_ra>
